<compile_context>
chip_gen: v7x
topology: tpu7x:2x2x1
jax: 0.10.0
libtpu: 0.0.40
codegen_flags: <defaults>
</compile_context>

<pallas_src>
import jax
import jax.numpy as jnp
from jax import lax
from jax.experimental import pallas as pl
from jax.experimental.pallas import tpu as pltpu

# ---- problem sizes (module defaults) ----
STATE_DIM = 48
N_AGENTS = 4
EMBED_DIM = 32            # mixing_embed_dim
HYPER_EMBED = 64          # hypernet_embed (hypernet_layers == 2)
BATCH = 16

_W1_ROWS = N_AGENTS * EMBED_DIM             # 128
_L1_OUT = 2 * HYPER_EMBED + 2 * EMBED_DIM   # 192  (h1 | h2 | b1 | hv)
_L2_OUT = _W1_ROWS + EMBED_DIM              # 160  (w1 | w_final)


def _qmix_kernel(qT_ref, s_ref,
                 wp_ref, bp_ref,    # fused first layer  [192, S], [192, 1]
                 w2_ref, b2_ref,    # fused block-diag second layer [160, 128], [160, 1]
                 wv2_ref, bv2_ref,  # V output layer [E, 1], [1, 1]
                 out_ref):
    """Feature-major QMIX forward: batch lives on the lane axis."""
    mxu_dtype = wp_ref.dtype
    s = s_ref[...]                                   # [TB, S]   f32
    qT = qT_ref[...].astype(jnp.float32)             # [A, TB]

    # ---- fused first layer: [192,48] x [48,TB] on the MXU ----
    # RHS (states) is contracted on its minor dim -> natural [TB,S] layout,
    # no wrapper transpose and no extra HBM pass over states.
    #   rows   0:128  hyper_w_1 L0 | hyper_w_final L0   (ReLU)
    #        128:160  hyper_b_1                          (no ReLU)
    #        160:192  V L0                               (ReLU)
    p0 = lax.dot_general(
        wp_ref[...], s.astype(mxu_dtype),
        (((1,), (1,)), ((), ())),
        preferred_element_type=jnp.float32) + bp_ref[...]          # [192, TB]
    h12 = jnp.maximum(p0[:2 * HYPER_EMBED, :], 0.0)                # [128, TB]
    b1 = p0[2 * HYPER_EMBED:2 * HYPER_EMBED + EMBED_DIM, :]        # [32, TB]
    hv = jnp.maximum(p0[2 * HYPER_EMBED + EMBED_DIM:, :], 0.0)     # [32, TB]

    # ---- fused block-diagonal second layer: [160,128] x [128,TB] ----
    #   rows 0:128  |hyper_w_1|  (A*E)      128:160  |hyper_w_final|  (E)
    p1 = jnp.dot(w2_ref[...], h12.astype(mxu_dtype),
                 preferred_element_type=jnp.float32) + b2_ref[...]  # [160, TB]
    w1 = jnp.abs(p1[:_W1_ROWS, :])                                  # [128, TB]
    wf = jnp.abs(p1[_W1_ROWS:, :])                                  # [32, TB]

    # ---- V output layer on the VPU/XLU (avoid an N=1 MXU matmul) ----
    v = jnp.sum(hv * wv2_ref[...], axis=0, keepdims=True) + bv2_ref[...]  # [1, TB]

    # bmm(agent_qs[b,1,A], w1[b,A,E]) + b1   ==   sum_a q[a,b] * w1[a*E+e, b]
    hidden = b1
    for a in range(N_AGENTS):          # small static loop, pure VPU elementwise
        hidden = hidden + qT[a:a + 1, :] * w1[a * EMBED_DIM:(a + 1) * EMBED_DIM, :]

    # ELU (args.policy_disc == True); clamp keeps exp overflow-safe.
    # (exp(min(h,0)) - 1 instead of expm1: abs error << tolerances.)
    hidden = jnp.where(hidden > 0, hidden,
                       jnp.exp(jnp.minimum(hidden, 0.0)) - 1.0)

    # y = bmm(hidden[b,1,E], w_final[b,E,1]) + v   ==   sum_e hidden*wf + v
    y = jnp.sum(hidden * wf, axis=0, keepdims=True) + v             # [1, TB]
    out_ref[...] = y.astype(out_ref.dtype)                          # lane-dense store


def pack_params(p, mxu_dtype=jnp.bfloat16):
    """Pack the 7 Linear layers into 2 fused [out,in] matmul weights + V row."""
    # First layer: all four Linears share LHS = states.
    wp = jnp.concatenate([p["w1h"], p["wfh"], p["wb1"], p["wv1"]], axis=1).T  # [192, S]
    bp = jnp.concatenate([p["b1h"], p["bfh"], p["bb1"], p["bv1"]], axis=1).T  # [192, 1]
    # Second layer: block-diagonal over (hyper_w_1 L1, hyper_w_final L1).
    w2 = jnp.zeros((_L2_OUT, 2 * HYPER_EMBED), jnp.float32)
    w2 = w2.at[:_W1_ROWS, :HYPER_EMBED].set(p["w1o"].T)
    w2 = w2.at[_W1_ROWS:, HYPER_EMBED:].set(p["wfo"].T)
    b2 = jnp.concatenate([p["b1o"], p["bfo"]], axis=1).T                      # [160, 1]
    # V output layer as a column vector for the VPU sublane reduce.
    wv2 = p["wv2"]                                                            # [E, 1]
    bv2 = p["bv2"]                                                            # [1, 1]
    return (wp.astype(mxu_dtype), bp.astype(jnp.float32),
            w2.astype(mxu_dtype), b2.astype(jnp.float32),
            wv2.astype(jnp.float32), bv2.astype(jnp.float32))


def _choose_tile_b(B, max_tile=2048):
    """Large batch tiles; >= 2 grid steps when possible so v7x uses both TCs."""
    if B % 256 == 0 and B // 2 <= max_tile:
        return B // 2                       # grid >= 2, lane-aligned tiles
    if B <= max_tile:
        return B                            # single step (small / launch-bound)
    t = max_tile
    while t >= 128:
        if B % t == 0:
            return t
        t -= 128
    raise ValueError("pad the batch to a multiple of 128 (or keep it <= 2048)")


def qmixer_forward(agent_qs, states, params, *, mxu_dtype=jnp.bfloat16, tile_b=None):
    """agent_qs: [B, n_agents], states: [B, state_dim] -> q_tot: [B, 1]."""
    B = agent_qs.shape[0]
    if tile_b is None:
        tile_b = _choose_tile_b(B)
    assert B % tile_b == 0, "pad B to a multiple of the batch tile"
    num_tiles = B // tile_b

    packed = pack_params(params, mxu_dtype)
    agent_qs_t = agent_qs.T                 # [A, B]; tiny, keeps kernel lane-major

    def _const_spec(arr):
        # Grid-invariant index map: the pipeline keeps the block resident and
        # skips re-copying it on every grid step (no Buffered(1) needed).
        nd = arr.ndim
        return pl.BlockSpec(arr.shape, lambda i, _nd=nd: (0,) * _nd)

    in_specs = [
        pl.BlockSpec((N_AGENTS, tile_b), lambda i: (0, i)),    # agent_qs (transposed)
        pl.BlockSpec((tile_b, STATE_DIM), lambda i: (i, 0)),   # states (natural layout)
    ] + [_const_spec(w) for w in packed]

    out = pl.pallas_call(
        _qmix_kernel,
        out_shape=jax.ShapeDtypeStruct((1, B), jnp.float32),   # lane-dense output row
        grid_spec=pltpu.PrefetchScalarGridSpec(
            num_scalar_prefetch=0,
            grid=(num_tiles,),
            in_specs=in_specs,
            out_specs=pl.BlockSpec((1, tile_b), lambda i: (0, i)),
        ),
        compiler_params=pltpu.CompilerParams(
            dimension_semantics=("parallel",)),
    )(agent_qs_t, states, *packed)
    return out.reshape(B, 1)


def init_params(key):
    """Deterministic synthetic parameters (torch.nn.Linear-style uniform init)."""
    def linear(k, fan_in, fan_out):
        kw, kb = jax.random.split(k)
        bound = 1.0 / jnp.sqrt(fan_in)
        w = jax.random.uniform(kw, (fan_in, fan_out), jnp.float32, -bound, bound)
        b = jax.random.uniform(kb, (1, fan_out), jnp.float32, -bound, bound)
        return w, b

    keys = jax.random.split(key, 7)
    p = {}
    # hyper_w_1: Linear(S, H) -> ReLU -> Linear(H, A*E)
    p["w1h"], p["b1h"] = linear(keys[0], STATE_DIM, HYPER_EMBED)
    p["w1o"], p["b1o"] = linear(keys[1], HYPER_EMBED, N_AGENTS * EMBED_DIM)
    # hyper_b_1: Linear(S, E)
    p["wb1"], p["bb1"] = linear(keys[2], STATE_DIM, EMBED_DIM)
    # hyper_w_final: Linear(S, H) -> ReLU -> Linear(H, E)
    p["wfh"], p["bfh"] = linear(keys[3], STATE_DIM, HYPER_EMBED)
    p["wfo"], p["bfo"] = linear(keys[4], HYPER_EMBED, EMBED_DIM)
    # V: Linear(S, E) -> ReLU -> Linear(E, 1)
    p["wv1"], p["bv1"] = linear(keys[5], STATE_DIM, EMBED_DIM)
    p["wv2"], p["bv2"] = linear(keys[6], EMBED_DIM, 1)
    return p


def qmixer_reference(agent_qs, states, p, mxu_dtype=jnp.float32):
    """Pure-JAX reference mirroring the PyTorch forward (policy_disc=True).

    `mxu_dtype` casts the same matmul inputs the kernel casts (bf16-matched
    reference), keeping the accuracy check tight for either precision.
    """
    c = lambda x: x.astype(mxu_dtype)
    def mm(a, b):
        return jnp.dot(c(a), c(b), preferred_element_type=jnp.float32)

    h1 = jnp.maximum(mm(states, p["w1h"]) + p["b1h"], 0.0)
    h2 = jnp.maximum(mm(states, p["wfh"]) + p["bfh"], 0.0)
    w1 = jnp.abs(mm(h1, p["w1o"]) + p["b1o"]).reshape(-1, N_AGENTS, EMBED_DIM)
    b1 = (mm(states, p["wb1"]) + p["bb1"]).reshape(-1, 1, EMBED_DIM)
    aq = agent_qs.reshape(-1, 1, N_AGENTS).astype(jnp.float32)
    hidden = jax.nn.elu(jnp.einsum("bij,bjk->bik", aq, w1) + b1)
    wf = jnp.abs(mm(h2, p["wfo"]) + p["bfo"]).reshape(-1, EMBED_DIM, 1)
    hv = jnp.maximum(mm(states, p["wv1"]) + p["bv1"], 0.0)
    v = (hv @ p["wv2"] + p["bv2"]).reshape(-1, 1, 1)     # V output layer stays f32
    y = jnp.einsum("bij,bjk->bik", hidden, wf) + v
    return y.reshape(agent_qs.shape[0], 1)


if __name__ == "__main__":
    key = jax.random.PRNGKey(0)
    k_q, k_s, k_p, k_q2, k_s2 = jax.random.split(key, 5)

    params = init_params(k_p)

    # ---- small demo shape (B = 16, module defaults) ----
    agent_qs = jax.random.normal(k_q, (BATCH, N_AGENTS), jnp.float32)
    states = jax.random.normal(k_s, (BATCH, STATE_DIM), jnp.float32)

    # f32 MXU path: tight check against the pure-f32 reference.
    out_f32 = jax.block_until_ready(
        qmixer_forward(agent_qs, states, params, mxu_dtype=jnp.float32))
    ref_f32 = qmixer_reference(agent_qs, states, params)
    assert out_f32.shape == (BATCH, 1)
    assert jnp.allclose(out_f32, ref_f32, atol=5e-4, rtol=5e-4), (out_f32, ref_f32)

    # bf16 MXU path (production default): check against a bf16-matched reference.
    out_bf16 = jax.block_until_ready(qmixer_forward(agent_qs, states, params))
    ref_bf16 = qmixer_reference(agent_qs, states, params, mxu_dtype=jnp.bfloat16)
    assert jnp.allclose(out_bf16, ref_bf16, atol=2e-3, rtol=2e-3), (out_bf16, ref_bf16)

    # Larger batch exercises the multi-tile, lane-dense-store, megacore path.
    B2 = 1024
    agent_qs2 = jax.random.normal(k_q2, (B2, N_AGENTS), jnp.float32)
    states2 = jax.random.normal(k_s2, (B2, STATE_DIM), jnp.float32)
    out2 = jax.block_until_ready(qmixer_forward(agent_qs2, states2, params))
    ref2 = qmixer_reference(agent_qs2, states2, params, mxu_dtype=jnp.bfloat16)
    assert out2.shape == (B2, 1)
    assert jnp.allclose(out2, ref2, atol=2e-3, rtol=2e-3)

    print("KERNEL_OK")
</pallas_src>

<mosaic_0001>
module attributes {stable_mosaic.version = 11 : i64} {
  func.func @_qmix_kernel(%arg0: i32, %arg1: memref<4x16xf32, #tpu.memory_space<vmem>>, %arg2: memref<16x48xf32, #tpu.memory_space<vmem>>, %arg3: memref<192x48xf32, #tpu.memory_space<vmem>>, %arg4: memref<192x1xf32, #tpu.memory_space<vmem>>, %arg5: memref<160x128xf32, #tpu.memory_space<vmem>>, %arg6: memref<160x1xf32, #tpu.memory_space<vmem>>, %arg7: memref<32x1xf32, #tpu.memory_space<vmem>>, %arg8: memref<1x1xf32, #tpu.memory_space<vmem>>, %arg9: memref<1x16xf32, #tpu.memory_space<vmem>>) attributes {dimension_semantics = [#tpu.dimension_semantics<parallel>], iteration_bounds = array<i64: 1>, scalar_prefetch = 0 : i64, scratch_operands = 0 : i64, tpu.core_type = #tpu.core_type<tc>, window_params = [{transform_indices = @transform_0, window_bounds = array<i64: 4, 16>}, {transform_indices = @transform_1, window_bounds = array<i64: 16, 48>}, {pipeline_mode = #tpu.pipeline_mode<synchronous>, transform_indices = @transform_2, window_bounds = array<i64: 192, 48>}, {pipeline_mode = #tpu.pipeline_mode<synchronous>, transform_indices = @transform_3, window_bounds = array<i64: 192, 1>}, {pipeline_mode = #tpu.pipeline_mode<synchronous>, transform_indices = @transform_4, window_bounds = array<i64: 160, 128>}, {pipeline_mode = #tpu.pipeline_mode<synchronous>, transform_indices = @transform_5, window_bounds = array<i64: 160, 1>}, {pipeline_mode = #tpu.pipeline_mode<synchronous>, transform_indices = @transform_6, window_bounds = array<i64: 32, 1>}, {pipeline_mode = #tpu.pipeline_mode<synchronous>, transform_indices = @transform_7, window_bounds = array<i64: 1, 1>}, {transform_indices = @transform_8, window_bounds = array<i64: 1, 16>}]} {
    %c0 = arith.constant 0 : index
    %c0_0 = arith.constant 0 : index
    %0 = vector.load %arg2[%c0, %c0_0] : memref<16x48xf32, #tpu.memory_space<vmem>>, vector<16x48xf32>
    %c0_1 = arith.constant 0 : index
    %c0_2 = arith.constant 0 : index
    %1 = vector.load %arg1[%c0_1, %c0_2] : memref<4x16xf32, #tpu.memory_space<vmem>>, vector<4x16xf32>
    %c0_3 = arith.constant 0 : index
    %c0_4 = arith.constant 0 : index
    %2 = vector.load %arg3[%c0_3, %c0_4] : memref<192x48xf32, #tpu.memory_space<vmem>>, vector<192x48xf32>
    %cst = arith.constant dense<0.000000e+00> : vector<192x16xf32>
    %3 = tpu.matmul %2, %0, %cst {dimension_numbers = #tpu.dot_dimension_numbers<[1], [1], [0], [0], [0, 0, 1, 0], [], []>} : vector<192x48xf32>, vector<16x48xf32>, vector<192x16xf32> -> vector<192x16xf32>
    %c0_5 = arith.constant 0 : index
    %c0_6 = arith.constant 0 : index
    %4 = vector.load %arg4[%c0_5, %c0_6] : memref<192x1xf32, #tpu.memory_space<vmem>>, vector<192x1xf32>
    %5 = vector.broadcast %4 : vector<192x1xf32> to vector<192x16xf32>
    %6 = arith.addf %3, %5 : vector<192x16xf32>
    %7 = vector.extract_strided_slice %6 {offsets = [0, 0], sizes = [128, 16], strides = [1, 1]} : vector<192x16xf32> to vector<128x16xf32>
    %cst_7 = arith.constant 0.000000e+00 : f32
    %8 = vector.broadcast %cst_7 : f32 to vector<128x16xf32>
    %9 = arith.maximumf %7, %8 : vector<128x16xf32>
    %10 = vector.extract_strided_slice %6 {offsets = [128, 0], sizes = [32, 16], strides = [1, 1]} : vector<192x16xf32> to vector<32x16xf32>
    %11 = vector.extract_strided_slice %6 {offsets = [160, 0], sizes = [32, 16], strides = [1, 1]} : vector<192x16xf32> to vector<32x16xf32>
    %cst_8 = arith.constant 0.000000e+00 : f32
    %12 = vector.broadcast %cst_8 : f32 to vector<32x16xf32>
    %13 = arith.maximumf %11, %12 : vector<32x16xf32>
    %c0_9 = arith.constant 0 : index
    %c0_10 = arith.constant 0 : index
    %14 = vector.load %arg5[%c0_9, %c0_10] : memref<160x128xf32, #tpu.memory_space<vmem>>, vector<160x128xf32>
    %cst_11 = arith.constant dense<0.000000e+00> : vector<160x16xf32>
    %15 = tpu.matmul %14, %9, %cst_11 {dimension_numbers = #tpu.dot_dimension_numbers<[1], [0], [0], [1], [0, 0, 1, 1], [], []>} : vector<160x128xf32>, vector<128x16xf32>, vector<160x16xf32> -> vector<160x16xf32>
    %c0_12 = arith.constant 0 : index
    %c0_13 = arith.constant 0 : index
    %16 = vector.load %arg6[%c0_12, %c0_13] : memref<160x1xf32, #tpu.memory_space<vmem>>, vector<160x1xf32>
    %17 = vector.broadcast %16 : vector<160x1xf32> to vector<160x16xf32>
    %18 = arith.addf %15, %17 : vector<160x16xf32>
    %19 = vector.extract_strided_slice %18 {offsets = [0, 0], sizes = [128, 16], strides = [1, 1]} : vector<160x16xf32> to vector<128x16xf32>
    %20 = math.absf %19 : vector<128x16xf32>
    %21 = vector.extract_strided_slice %18 {offsets = [128, 0], sizes = [32, 16], strides = [1, 1]} : vector<160x16xf32> to vector<32x16xf32>
    %22 = math.absf %21 : vector<32x16xf32>
    %c0_14 = arith.constant 0 : index
    %c0_15 = arith.constant 0 : index
    %23 = vector.load %arg7[%c0_14, %c0_15] : memref<32x1xf32, #tpu.memory_space<vmem>>, vector<32x1xf32>
    %24 = vector.broadcast %23 : vector<32x1xf32> to vector<32x16xf32>
    %25 = arith.mulf %13, %24 : vector<32x16xf32>
    %cst_16 = arith.constant dense<0.000000e+00> : vector<16xf32>
    %26 = vector.multi_reduction <add>, %25, %cst_16 [0] : vector<32x16xf32> to vector<16xf32>
    %27 = vector.shape_cast %26 : vector<16xf32> to vector<1x16xf32>
    %c0_17 = arith.constant 0 : index
    %c0_18 = arith.constant 0 : index
    %28 = vector.load %arg8[%c0_17, %c0_18] : memref<1x1xf32, #tpu.memory_space<vmem>>, vector<1x1xf32>
    %29 = vector.broadcast %28 : vector<1x1xf32> to vector<1x16xf32>
    %30 = arith.addf %27, %29 : vector<1x16xf32>
    %31 = vector.extract_strided_slice %1 {offsets = [0, 0], sizes = [1, 16], strides = [1, 1]} : vector<4x16xf32> to vector<1x16xf32>
    %32 = vector.extract_strided_slice %20 {offsets = [0, 0], sizes = [32, 16], strides = [1, 1]} : vector<128x16xf32> to vector<32x16xf32>
    %33 = vector.broadcast %31 : vector<1x16xf32> to vector<32x16xf32>
    %34 = arith.mulf %33, %32 : vector<32x16xf32>
    %35 = arith.addf %10, %34 : vector<32x16xf32>
    %36 = vector.extract_strided_slice %1 {offsets = [1, 0], sizes = [1, 16], strides = [1, 1]} : vector<4x16xf32> to vector<1x16xf32>
    %37 = vector.extract_strided_slice %20 {offsets = [32, 0], sizes = [32, 16], strides = [1, 1]} : vector<128x16xf32> to vector<32x16xf32>
    %38 = vector.broadcast %36 : vector<1x16xf32> to vector<32x16xf32>
    %39 = arith.mulf %38, %37 : vector<32x16xf32>
    %40 = arith.addf %35, %39 : vector<32x16xf32>
    %41 = vector.extract_strided_slice %1 {offsets = [2, 0], sizes = [1, 16], strides = [1, 1]} : vector<4x16xf32> to vector<1x16xf32>
    %42 = vector.extract_strided_slice %20 {offsets = [64, 0], sizes = [32, 16], strides = [1, 1]} : vector<128x16xf32> to vector<32x16xf32>
    %43 = vector.broadcast %41 : vector<1x16xf32> to vector<32x16xf32>
    %44 = arith.mulf %43, %42 : vector<32x16xf32>
    %45 = arith.addf %40, %44 : vector<32x16xf32>
    %46 = vector.extract_strided_slice %1 {offsets = [3, 0], sizes = [1, 16], strides = [1, 1]} : vector<4x16xf32> to vector<1x16xf32>
    %47 = vector.extract_strided_slice %20 {offsets = [96, 0], sizes = [32, 16], strides = [1, 1]} : vector<128x16xf32> to vector<32x16xf32>
    %48 = vector.broadcast %46 : vector<1x16xf32> to vector<32x16xf32>
    %49 = arith.mulf %48, %47 : vector<32x16xf32>
    %50 = arith.addf %45, %49 : vector<32x16xf32>
    %cst_19 = arith.constant 0.000000e+00 : f32
    %51 = vector.broadcast %cst_19 : f32 to vector<32x16xf32>
    %52 = arith.cmpf ogt, %50, %51 : vector<32x16xf32>
    %cst_20 = arith.constant 0.000000e+00 : f32
    %53 = vector.broadcast %cst_20 : f32 to vector<32x16xf32>
    %54 = arith.minimumf %50, %53 : vector<32x16xf32>
    %55 = math.exp %54 : vector<32x16xf32>
    %cst_21 = arith.constant 1.000000e+00 : f32
    %56 = vector.broadcast %cst_21 : f32 to vector<32x16xf32>
    %57 = arith.subf %55, %56 : vector<32x16xf32>
    %58 = arith.select %52, %50, %57 : vector<32x16xi1>, vector<32x16xf32>
    %59 = arith.mulf %58, %22 : vector<32x16xf32>
    %cst_22 = arith.constant dense<0.000000e+00> : vector<16xf32>
    %60 = vector.multi_reduction <add>, %59, %cst_22 [0] : vector<32x16xf32> to vector<16xf32>
    %61 = vector.shape_cast %60 : vector<16xf32> to vector<1x16xf32>
    %62 = arith.addf %61, %30 : vector<1x16xf32>
    %c0_23 = arith.constant 0 : index
    %c0_24 = arith.constant 0 : index
    %63 = vector.load %arg9[%c0_23, %c0_24] : memref<1x16xf32, #tpu.memory_space<vmem>>, vector<1x16xf32>
    tpu.vector_store %arg9[%c0_23, %c0_24], %62 {strides = array<i32>} : memref<1x16xf32, #tpu.memory_space<vmem>>, vector<1x16xf32>,
    return
  }
  func.func @transform_0(%arg0: i32) -> (i32, i32) {
    %c0_i32 = arith.constant 0 : i32
    %c0_i32_0 = arith.constant 0 : i32
    return %c0_i32, %arg0 : i32, i32
  }
  func.func @transform_1(%arg0: i32) -> (i32, i32) {
    %c0_i32 = arith.constant 0 : i32
    %c0_i32_0 = arith.constant 0 : i32
    return %arg0, %c0_i32 : i32, i32
  }
  func.func @transform_2(%arg0: i32) -> (i32, i32) {
    %c0_i32 = arith.constant 0 : i32
    %c0_i32_0 = arith.constant 0 : i32
    %c0_i32_1 = arith.constant 0 : i32
    return %c0_i32, %c0_i32_0 : i32, i32
  }
  func.func @transform_3(%arg0: i32) -> (i32, i32) {
    %c0_i32 = arith.constant 0 : i32
    %c0_i32_0 = arith.constant 0 : i32
    %c0_i32_1 = arith.constant 0 : i32
    return %c0_i32, %c0_i32_0 : i32, i32
  }
  func.func @transform_4(%arg0: i32) -> (i32, i32) {
    %c0_i32 = arith.constant 0 : i32
    %c0_i32_0 = arith.constant 0 : i32
    %c0_i32_1 = arith.constant 0 : i32
    return %c0_i32, %c0_i32_0 : i32, i32
  }
  func.func @transform_5(%arg0: i32) -> (i32, i32) {
    %c0_i32 = arith.constant 0 : i32
    %c0_i32_0 = arith.constant 0 : i32
    %c0_i32_1 = arith.constant 0 : i32
    return %c0_i32, %c0_i32_0 : i32, i32
  }
  func.func @transform_6(%arg0: i32) -> (i32, i32) {
    %c0_i32 = arith.constant 0 : i32
    %c0_i32_0 = arith.constant 0 : i32
    %c0_i32_1 = arith.constant 0 : i32
    return %c0_i32, %c0_i32_0 : i32, i32
  }
  func.func @transform_7(%arg0: i32) -> (i32, i32) {
    %c0_i32 = arith.constant 0 : i32
    %c0_i32_0 = arith.constant 0 : i32
    %c0_i32_1 = arith.constant 0 : i32
    return %c0_i32, %c0_i32_0 : i32, i32
  }
  func.func @transform_8(%arg0: i32) -> (i32, i32) {
    %c0_i32 = arith.constant 0 : i32
    %c0_i32_0 = arith.constant 0 : i32
    return %c0_i32, %arg0 : i32, i32
  }
}

</mosaic_0001>

<bundles_post_ra>
// kernel: tpu_custom_call.1
= control target key start
LH: loop header
LB: loop body
LE: loop exit
PB: predicated region body
PF: predicated region fallthrough
CT: control target
= control target key end

     0   :  { %s1770_s0 = inlined_call_operand.vmem [shape: f32[4,16], index: 0, kind: input, shape index: {}]   ;;  %s1771_s1 = inlined_call_operand.vmem [shape: f32[16,48], index: 1, kind: input, shape index: {}]   ;;  %s1772_s2 = inlined_call_operand.vmem [shape: f32[192,48], index: 2, kind: input, shape index: {}]   ;;  %s1773_s3 = inlined_call_operand.vmem [shape: f32[192,1], index: 3, kind: input, shape index: {}]   ;;  %s1774_s4 = inlined_call_operand.vmem [shape: f32[160,128], index: 4, kind: input, shape index: {}]   ;;  %s1775_s5 = inlined_call_operand.vmem [shape: f32[160,1], index: 5, kind: input, shape index: {}]   ;;  %s1776_s6 = inlined_call_operand.vmem [shape: f32[32,1], index: 6, kind: input, shape index: {}]   ;;  %s1777_s7 = inlined_call_operand.<no memory space> [shape: f32[1,1], index: 7, kind: input, shape index: {}]   ;;  %s1778_s8 = inlined_call_operand.hbm [shape: f32[1,16], index: 8, kind: output, shape index: {}]  }
   0x1   :  { %v13_v0 = vstv %s1777_s7 }
   0x2   :  { %14 = vst [vmem:[#allocation2] sm:$0x1] %v13_v0 }
   0x3   :  { %v59_v1 = vld [vmem:[%s1773_s3] sm:$0xff]  ;;  %v33_v3 = vld [vmem:[%s1771_s1 + $0x8] sm:$0xff]  ;;  %vm203_vm0 = vcmask 392192   ;;  %v1255_v4 = vmov 0   ;;  %v61_v6 = vld [vmem:[%s1773_s3 + $0x10] sm:$0xff] }
   0x4   :  { %v32_v2 = vld [vmem:[%s1771_s1] sm:$0xff]  ;;  %1221 = vset.pattern.permute.xlu0 %v1255_v4  ;;  %vm1166_vm1 = vmpackc.low %vm203_vm0, %vm203_vm0  ;;  %1222 = vset.pattern.permute.xlu1 %v1255_v4  ;;  %v60_v8 = vld [vmem:[%s1773_s3 + $0x8] sm:$0xff] }
   0x5   :  { %v1165_v5 = vpack.c.bf16 %v33_v3, %v32_v2  ;;  %85 = vperm.xlu0 %1221, %v59_v1   ;;  %95 = vperm.xlu1 %1222, %v61_v6   ;;  %v35_v7 = vld [vmem:[%s1772_s2] sm:$0xff]  ;;  %v62_v9 = vld [vmem:[%s1773_s3 + $0x18] sm:$0xff]  ;;  %v64_v11 = vld [vmem:[%s1773_s3 + $0x28] sm:$0xff] }
   0x6   :  { %1067 = vmatprep.mubr.msk.f32.mxu0 %vm203_vm0, %v35_v7  ;;  %v63_v10 = vld [vmem:[%s1773_s3 + $0x20] sm:$0xff]  ;;  %v36_v12 = vld [vmem:[%s1772_s2 + $0x8] sm:$0xff]  ;;  %v37_v13 = vld [vmem:[%s1772_s2 + $0x10] sm:$0xff] }
   0x7   :  { %1167 = vmatprep.subr.msk.bf16.mxu0 %vm1166_vm1, %v1165_v5  ;;  %v65_v14 = vld [vmem:[%s1773_s3 + $0x30] sm:$0xff]  ;;  %v66_v15 = vld [vmem:[%s1773_s3 + $0x38] sm:$0xff]  ;;  %v39_v17 = vld [vmem:[%s1772_s2 + $0x20] sm:$0xff] }
   0x8   :  { %1170 = vmatpush3.bf16.xpose.msk.msra.mxu0 %vm1166_vm1, %v1165_v5  ;;  %v38_v16 = vld [vmem:[%s1772_s2 + $0x18] sm:$0xff]  ;;  %v67_v18 = vld [vmem:[%s1773_s3 + $0x40] sm:$0xff]  ;;  %v68_v19 = vld [vmem:[%s1773_s3 + $0x48] sm:$0xff] }
   0x9   :  { %90 = vperm.xlu0 %1221, %v60_v8   ;;  %100 = vperm.xlu1 %1222, %v62_v9   ;;  %v40_v20 = vld [vmem:[%s1772_s2 + $0x28] sm:$0xff]  ;;  %v41_v21 = vld [vmem:[%s1772_s2 + $0x30] sm:$0xff]  ;;  %v70_v23 = vld [vmem:[%s1773_s3 + $0x58] sm:$0xff] }
   0xa   :  { %v69_v22 = vld [vmem:[%s1773_s3 + $0x50] sm:$0xff]  ;;  %v42_v24 = vld [vmem:[%s1772_s2 + $0x38] sm:$0xff]  ;;  %v43_v25 = vld [vmem:[%s1772_s2 + $0x40] sm:$0xff] }
   0xb   :  { %v71_v26 = vld [vmem:[%s1773_s3 + $0x60] sm:$0xff]  ;;  %v72_v27 = vld [vmem:[%s1773_s3 + $0x68] sm:$0xff]  ;;  %v45_v29 = vld [vmem:[%s1772_s2 + $0x50] sm:$0xff] }
   0xc   :  { %v44_v28 = vld [vmem:[%s1772_s2 + $0x48] sm:$0xff] }
   0xd   :  { %105 = vperm.xlu0 %1221, %v63_v10   ;;  %110 = vperm.xlu1 %1222, %v64_v11  }
   0xf   :  { %1068 = vmatmul.mubr.msk.f32.vlgmr.msra.gmra.mrb[0].mxu0 %vm203_vm0, %v36_v12 }
  0x10   :  { %1070 = vmatprep.mubr.msk.f32.mxu0 %vm203_vm0, %v37_v13 }
  0x11   :  { %115 = vperm.xlu0 %1221, %v65_v14   ;;  %120 = vperm.xlu1 %1222, %v66_v15  }
  0x13   :  { %1071 = vmatmul.mubr.msk.f32.gmra.mrb[2].mxu0 %vm203_vm0, %v38_v16 }
  0x14   :  { %1073 = vmatprep.mubr.msk.f32.mxu0 %vm203_vm0, %v39_v17 }
  0x15   :  { %125 = vperm.xlu0 %1221, %v67_v18   ;;  %130 = vperm.xlu1 %1222, %v68_v19  }
  0x17   :  { %1074 = vmatmul.mubr.msk.f32.gmra.mrb[4].mxu0 %vm203_vm0, %v40_v20 }
  0x18   :  { %1076 = vmatprep.mubr.msk.f32.mxu0 %vm203_vm0, %v41_v21 }
  0x19   :  { %135 = vperm.xlu0 %1221, %v69_v22   ;;  %140 = vperm.xlu1 %1222, %v70_v23  }
  0x1b   :  { %1077 = vmatmul.mubr.msk.f32.gmra.mrb[6].mxu0 %vm203_vm0, %v42_v24 }
  0x1c   :  { %1079 = vmatprep.mubr.msk.f32.mxu0 %vm203_vm0, %v43_v25 }
  0x1d   :  { %15 = vsyncpa [#allocation4], 0  ;;  %145 = vperm.xlu0 %1221, %v71_v26   ;;  %150 = vperm.xlu1 %1222, %v72_v27   ;;  %v73_v30 = vld [vmem:[%s1773_s3 + $0x70] sm:$0xff]  ;;  %v74_v31 = vld [vmem:[%s1773_s3 + $0x78] sm:$0xff]  ;;  %vm840_vm2 = vcmask 130048   ;;  %vm955_vm7 = vcmask 122880  }
  0x1e   :  { %v46_v32 = vld [vmem:[%s1772_s2 + $0x58] sm:$0xff]  ;;  %v47_v33 = vld [vmem:[%s1772_s2 + $0x60] sm:$0xff]  ;;  %v76_v35 = vld [vmem:[%s1773_s3 + $0x88] sm:$0xff] }
  0x1f   :  { %1080 = vmatmul.mubr.msk.f32.gmra.mrb[8].mxu0 %vm203_vm0, %v44_v28  ;;  %v75_v34 = vld [vmem:[%s1773_s3 + $0x80] sm:$0xff]  ;;  %v48_v36 = vld [vmem:[%s1772_s2 + $0x68] sm:$0xff]  ;;  %v49_v37 = vld [vmem:[%s1772_s2 + $0x70] sm:$0xff] }
  0x20   :  { %1082 = vmatprep.mubr.msk.f32.mxu0 %vm203_vm0, %v45_v29  ;;  %v77_v38 = vld [vmem:[%s1773_s3 + $0x90] sm:$0xff]  ;;  %v507_v39 = vld [vmem:[%s1775_s5] sm:$0xff]  ;;  %v50_v40 = vld [vmem:[%s1772_s2 + $0x78] sm:$0xff] }
  0x21   :  { %155 = vperm.xlu0 %1221, %v73_v30   ;;  %160 = vperm.xlu1 %1222, %v74_v31   ;;  %v51_v41 = vld [vmem:[%s1772_s2 + $0x80] sm:$0xff]  ;;  %v508_v42 = vld [vmem:[%s1775_s5 + $0x8] sm:$0xff]  ;;  %v509_v43 = vld [vmem:[%s1775_s5 + $0x10] sm:$0xff] }
  0x22   :  { %v52_v44 = vld [vmem:[%s1772_s2 + $0x88] sm:$0xff]  ;;  %v53_v45 = vld [vmem:[%s1772_s2 + $0x90] sm:$0xff]  ;;  %v511_v46 = vld [vmem:[%s1775_s5 + $0x20] sm:$0xff] }
  0x23   :  { %1083 = vmatmul.mubr.msk.f32.gmra.mrb[10].mxu0 %vm203_vm0, %v46_v32  ;;  %v512_v47 = vld [vmem:[%s1775_s5 + $0x28] sm:$0xff]  ;;  %v54_v48 = vld [vmem:[%s1772_s2 + $0x98] sm:$0xff]  ;;  %v55_v49 = vld [vmem:[%s1772_s2 + $0xa0] sm:$0xff] }
  0x24   :  { %1085 = vmatprep.mubr.msk.f32.mxu0 %vm203_vm0, %v47_v33  ;;  %v510_v50 = vld [vmem:[%s1775_s5 + $0x18] sm:$0xff]  ;;  %v513_v51 = vld [vmem:[%s1775_s5 + $0x30] sm:$0xff]  ;;  %v56_v52 = vld [vmem:[%s1772_s2 + $0xa8] sm:$0xff] }
  0x25   :  { %165 = vperm.xlu0 %1221, %v75_v34   ;;  %170 = vperm.xlu1 %1222, %v76_v35   ;;  %v57_v53 = vld [vmem:[%s1772_s2 + $0xb0] sm:$0xff]  ;;  %v515_v54 = vld [vmem:[%s1775_s5 + $0x40] sm:$0xff]  ;;  %v516_v55 = vld [vmem:[%s1775_s5 + $0x48] sm:$0xff] }
  0x26   :  { %v58_v56 = vld [vmem:[%s1772_s2 + $0xb8] sm:$0xff]  ;;  %v517_v58 = vld [vmem:[%s1775_s5 + $0x50] sm:$0xff]  ;;  %v519_v59 = vld [vmem:[%s1775_s5 + $0x60] sm:$0xff] }
  0x27   :  { %1086 = vmatmul.mubr.msk.f32.gmra.mrb[12].mxu0 %vm203_vm0, %v48_v36  ;;  %v514_v57 = vld [vmem:[%s1775_s5 + $0x38] sm:$0xff]  ;;  %v520_v60 = vld [vmem:[%s1775_s5 + $0x68] sm:$0xff]  ;;  %v521_v63 = vld [vmem:[%s1775_s5 + $0x70] sm:$0xff] }
  0x28   :  { %1088 = vmatprep.mubr.msk.f32.mxu0 %vm203_vm0, %v49_v37  ;;  %v78_v61 = vld [vmem:[%s1773_s3 + $0x98] sm:$0xff]  ;;  %v79_v1 = vld [vmem:[%s1773_s3 + $0xa0] sm:$0xff]  ;;  %v80_v2 = vld [vmem:[%s1773_s3 + $0xa8] sm:$0xff] }
  0x29   :  { %175 = vperm.xlu0 %1221, %v77_v38   ;;  %529 = vperm.xlu1 %1222, %v507_v39   ;;  %v518_v62 = vld [vmem:[%s1775_s5 + $0x58] sm:$0xff]  ;;  %v81_v3 = vld [vmem:[%s1773_s3 + $0xb0] sm:$0xff]  ;;  %v523_v4 = vld [vmem:[%s1775_s5 + $0x80] sm:$0xff] }
  0x2a   :  { %v522_v0 = vld [vmem:[%s1775_s5 + $0x78] sm:$0xff]  ;;  %v524_v5 = vld [vmem:[%s1775_s5 + $0x88] sm:$0xff]  ;;  %v525_v7 = vld [vmem:[%s1775_s5 + $0x90] sm:$0xff] }
  0x2b   :  { %1089 = vmatmul.mubr.msk.f32.gmra.mrb[14].mxu0 %vm203_vm0, %v50_v40  ;;  %v82_v6 = vld [vmem:[%s1773_s3 + $0xb8] sm:$0xff]  ;;  %v812_v8 = vld [vmem:[%s1776_s6] sm:$0xff]  ;;  %v813_v9 = vld [vmem:[%s1776_s6 + $0x8] sm:$0xff] }
  0x2c   :  { %1091 = vmatprep.mubr.msk.f32.mxu0 %vm203_vm0, %v51_v41  ;;  %v526_v10 = vld [vmem:[%s1775_s5 + $0x98] sm:$0xff]  ;;  %v814_v11 = vld [vmem:[%s1776_s6 + $0x10] sm:$0xff]  ;;  %v854_v13 = vld [vmem:[#allocation2] sm:$0x1] }
  0x2d   :  { %534 = vperm.xlu0 %1221, %v508_v42   ;;  %539 = vperm.xlu1 %1222, %v509_v43   ;;  %v815_v12 = vld [vmem:[%s1776_s6 + $0x18] sm:$0xff]  ;;  %v487_v15 = vld [vmem:[%s1774_s4] sm:$0xff] }
  0x2e   :  { %v491_v16 = vld [vmem:[%s1774_s4 + $0x20] sm:$0xff] }
  0x2f   :  { %1092 = vmatmul.mubr.msk.f32.gmra.mrb[16].mxu0 %vm203_vm0, %v52_v44  ;;  %1141 = vmatprep.mubr.f32.mxu1 %v491_v16 }
  0x30   :  { %1094 = vmatprep.mubr.msk.f32.mxu0 %vm203_vm0, %v53_v45 }
  0x31   :  { %549 = vperm.xlu0 %1221, %v511_v46   ;;  %554 = vperm.xlu1 %1222, %v512_v47  }
  0x33   :  { %1095 = vmatmul.mubr.msk.f32.gmra.mrb[18].mxu0 %vm203_vm0, %v54_v48 }
  0x34   :  { %1097 = vmatprep.mubr.msk.f32.mxu0 %vm203_vm0, %v55_v49 }
  0x35   :  { %544 = vperm.xlu0 %1221, %v510_v50   ;;  %559 = vperm.xlu1 %1222, %v513_v51  }
  0x37   :  { %1098 = vmatmul.mubr.msk.f32.gmra.mrb[20].mxu0 %vm203_vm0, %v56_v52 }
  0x38   :  { %1100 = vmatprep.mubr.msk.f32.mxu0 %vm203_vm0, %v57_v53 }
  0x39   :  { %569 = vperm.xlu0 %1221, %v515_v54   ;;  %574 = vperm.xlu1 %1222, %v516_v55  }
  0x3b   :  { %1101 = vmatmul.mubr.msk.f32.gmra.mrb[22].mxu0 %vm203_vm0, %v58_v56 }
  0x3c   :  { %1135 = vmatprep.mubr.f32.mxu0 %v487_v15 }
  0x3d   :  { %564 = vperm.xlu0 %1221, %v514_v57   ;;  %579 = vperm.xlu1 %1222, %v517_v58  }
  0x41   :  { %589 = vperm.xlu0 %1221, %v519_v59   ;;  %594 = vperm.xlu1 %1222, %v520_v60  }
  0x45   :  { %180 = vperm.xlu0 %1221, %v78_v61   ;;  %584 = vperm.xlu1 %1222, %v518_v62  }
  0x49   :  { %599 = vperm.xlu0 %1221, %v521_v63   ;;  %604 = vperm.xlu1 %1222, %v522_v0  }
  0x4d   :  { %185 = vperm.xlu0 %1221, %v79_v1   ;;  %190 = vperm.xlu1 %1222, %v80_v2  }
  0x51   :  { %195 = vperm.xlu0 %1221, %v81_v3   ;;  %609 = vperm.xlu1 %1222, %v523_v4  }
  0x55   :  { %614 = vperm.xlu0 %1221, %v524_v5   ;;  %200 = vperm.xlu1 %1222, %v82_v6  }
  0x59   :  { %619 = vperm.xlu0 %1221, %v525_v7   ;;  %818 = vperm.xlu1 %1222, %v812_v8  }
  0x5d   :  { %823 = vperm.xlu0 %1221, %v813_v9   ;;  %624 = vperm.xlu1 %1222, %v526_v10  }
  0x61   :  { %828 = vperm.xlu0 %1221, %v814_v11   ;;  %833 = vperm.xlu1 %1222, %v815_v12  }
  0x65   :  { %857 = vperm.xlu0 %1221, %v854_v13  }
  0x84   :  { %v86_v14 = vpop.permute.xlu0 %85  ;;  %v96_v17 = vpop.permute.xlu1 %95 }
  0x88   :  { %v91_v18 = vpop.permute.xlu0 %90  ;;  %v101_v19 = vpop.permute.xlu1 %100 }
  0x8c   :  { %v106_v20 = vpop.permute.xlu0 %105  ;;  %v111_v21 = vpop.permute.xlu1 %110 }
  0x90   :  { %v116_v22 = vpop.permute.xlu0 %115  ;;  %v121_v23 = vpop.permute.xlu1 %120 }
  0x94   :  { %v1559_v24 = vpop.permute.xlu0 %125  ;;  %v1561_v25 = vpop.permute.xlu1 %130 }
  0x98   :  { %v1563_v26 = vpop.permute.xlu0 %135  ;;  %v1565_v27 = vpop.permute.xlu1 %140 }
  0x9c   :  { %v1567_v28 = vpop.permute.xlu0 %145  ;;  %v1569_v29 = vpop.permute.xlu1 %150 }
  0xa0   :  { %v1571_v30 = vpop.permute.xlu0 %155  ;;  %v1573_v31 = vpop.permute.xlu1 %160 }
  0xa4   :  { %v1575_v32 = vpop.permute.xlu0 %165  ;;  %v1577_v33 = vpop.permute.xlu1 %170 }
  0xa8   :  { %v1579_v34 = vpop.permute.xlu0 %175  ;;  %v1581_v35 = vpop.permute.xlu1 %529 }
  0xac   :  { %v1583_v36 = vpop.permute.xlu0 %534  ;;  %v1585_v37 = vpop.permute.xlu1 %539 }
  0xb0   :  { %v1587_v38 = vpop.permute.xlu0 %549  ;;  %v1589_v39 = vpop.permute.xlu1 %554 }
  0xb4   :  { %v1591_v40 = vpop.permute.xlu0 %544  ;;  %v1593_v41 = vpop.permute.xlu1 %559 }
  0xb8   :  { %v1595_v42 = vpop.permute.xlu0 %569  ;;  %v1597_v43 = vpop.permute.xlu1 %574 }
  0xbc   :  { %v1599_v44 = vpop.permute.xlu0 %564  ;;  %v1601_v45 = vpop.permute.xlu1 %579 }
  0xc0   :  { %v1603_v46 = vpop.permute.xlu0 %589  ;;  %v1605_v48 = vpop.permute.xlu1 %594 }
  0xc4   :  { %v1607_v57 = vpop.permute.xlu0 %180  ;;  %v1609_v60 = vpop.permute.xlu1 %584 }
  0xc8   :  { %v1611_v5 = vpop.permute.xlu0 %599  ;;  %v1613_v8 = vpop.permute.xlu1 %604 }
  0xe2   :  { %v1069_v47 = vpop.f32.mrb[0].mxu0 }
  0xe3   :  { %v354_v49 = vadd.f32 %v1069_v47, %v91_v18  ;;  %v348_v50 = vpop.f32.mrb[1].mxu0  ;;  %v1616_v18 = vpop.permute.xlu0 %185 }
  0xe4   :  { %v349_v51 = vadd.f32 %v348_v50, %v86_v14 }
  0xe5   :  { %v468_v52 = vmax.f32 %v354_v49, 0.0 }
  0xe6   :  { %v467_v53 = vmax.f32 %v349_v51, 0.0  ;;  %v1072_v54 = vpop.f32.mrb[2].mxu0 }
  0xe7   :  { %v364_v55 = vadd.f32 %v1072_v54, %v101_v19  ;;  %v358_v56 = vpop.f32.mrb[3].mxu0 }
  0xe8   :  { %v1171_v58 = vpack.c.bf16 %v468_v52, %v467_v53  ;;  %v359_v59 = vadd.f32 %v358_v56, %v96_v17  ;;  %v1621_v53 = vpop.permute.xlu0 %195 }
  0xe9   :  { %v470_v61 = vmax.f32 %v364_v55, 0.0 }
  0xea   :  { %v469_v62 = vmax.f32 %v359_v59, 0.0  ;;  %v1075_v63 = vpop.f32.mrb[4].mxu0  ;;  %1172 = vmatprep.subr.bf16.mxu0 %v1171_v58  ;;  %1203 = vmatprep.subr.bf16.mxu1 %v1171_v58 }
  0xeb   :  { %v374_v0 = vadd.f32 %v1075_v63, %v111_v21  ;;  %v368_v1 = vpop.f32.mrb[5].mxu0  ;;  %1174 = vmatpush3.bf16.msra.mxu0 %v1171_v58  ;;  %1211 = vmatpush3.bf16.msra.mxu1 %v1171_v58  ;;  %v191_v21 = vpop.permute.xlu1 %190 }
  0xec   :  { %v1175_v2 = vpack.c.bf16 %v470_v61, %v469_v62  ;;  %v369_v3 = vadd.f32 %v368_v1, %v106_v20  ;;  %v1628_v1 = vpop.permute.xlu0 %614 }
  0xed   :  { %v472_v4 = vmax.f32 %v374_v0, 0.0 }
  0xee   :  { %v471_v6 = vmax.f32 %v369_v3, 0.0  ;;  %v1078_v7 = vpop.f32.mrb[6].mxu0  ;;  %1176 = vmatprep.subr.bf16.mxu0 %v1175_v2  ;;  %1204 = vmatprep.subr.bf16.mxu1 %v1175_v2 }
  0xef   :  { %v384_v9 = vadd.f32 %v1078_v7, %v121_v23  ;;  %v378_v10 = vpop.f32.mrb[7].mxu0  ;;  %1178 = vmatpush3.bf16.msra.mxu0 %v1175_v2  ;;  %1212 = vmatpush3.bf16.msra.mxu1 %v1175_v2 }
  0xf0   :  { %v1179_v11 = vpack.c.bf16 %v472_v4, %v471_v6  ;;  %v379_v12 = vadd.f32 %v378_v10, %v116_v22 }
  0xf1   :  { %v474_v13 = vmax.f32 %v384_v9, 0.0  ;;  %v1635_v9 = vpop.permute.xlu0 %619 }
  0xf2   :  { %v473_v14 = vmax.f32 %v379_v12, 0.0  ;;  %v1081_v15 = vpop.f32.mrb[8].mxu0  ;;  %1180 = vmatprep.subr.bf16.mxu0 %v1179_v11  ;;  %1205 = vmatprep.subr.bf16.mxu1 %v1179_v11  ;;  %v488_v12 = vld [vmem:[%s1774_s4 + $0x8] sm:$0xff] }
  0xf3   :  { %v394_v16 = vadd.f32 %v1081_v15, %v1561_v25  ;;  %v388_v17 = vpop.f32.mrb[9].mxu0  ;;  %1182 = vmatpush3.bf16.msra.mxu0 %v1179_v11  ;;  %1213 = vmatpush3.bf16.msra.mxu1 %v1179_v11  ;;  %v493_v15 = vld [vmem:[%s1774_s4 + $0x30] sm:$0xff] }
  0xf4   :  { %v1183_v19 = vpack.c.bf16 %v474_v13, %v473_v14  ;;  %v389_v20 = vadd.f32 %v388_v17, %v1559_v24  ;;  %v1623_v24 = vpop.permute.xlu1 %609  ;;  %v492_v13 = vld [vmem:[%s1774_s4 + $0x28] sm:$0xff]  ;;  %v489_v14 = vld [vmem:[%s1774_s4 + $0x10] sm:$0xff] }
  0xf5   :  { %v476_v23 = vmax.f32 %v394_v16, 0.0 }
  0xf6   :  { %v475_v47 = vmax.f32 %v389_v20, 0.0  ;;  %v1084_v49 = vpop.f32.mrb[10].mxu0  ;;  %1184 = vmatprep.subr.bf16.mxu0 %v1183_v19  ;;  %1206 = vmatprep.subr.bf16.mxu1 %v1183_v19  ;;  %v490_v20 = vld [vmem:[%s1774_s4 + $0x18] sm:$0xff] }
  0xf7   :  { %v404_v22 = vadd.f32 %v1084_v49, %v1565_v27  ;;  %v398_v50 = vpop.f32.mrb[11].mxu0  ;;  %1186 = vmatpush3.bf16.msra.mxu0 %v1183_v19  ;;  %1214 = vmatpush3.bf16.msra.mxu1 %v1183_v19  ;;  %v495_v49 = vld [vmem:[%s1774_s4 + $0x40] sm:$0xff] }
  0xf8   :  { %v1187_v25 = vpack.c.bf16 %v476_v23, %v475_v47  ;;  %v399_v51 = vadd.f32 %v398_v50, %v1563_v26  ;;  %v201_v3 = vpop.permute.xlu1 %200  ;;  %v494_v23 = vld [vmem:[%s1774_s4 + $0x38] sm:$0xff] }
  0xf9   :  { %v478_v52 = vmax.f32 %v404_v22, 0.0  ;;  %v824_v22 = vpop.permute.xlu0 %823 }
  0xfa   :  { %v477_v54 = vmax.f32 %v399_v51, 0.0  ;;  %v1087_v55 = vpop.f32.mrb[12].mxu0  ;;  %1188 = vmatprep.subr.bf16.mxu0 %v1187_v25  ;;  %1207 = vmatprep.subr.bf16.mxu1 %v1187_v25 }
  0xfb   :  { %v414_v56 = vadd.f32 %v1087_v55, %v1569_v29  ;;  %v408_v58 = vpop.f32.mrb[13].mxu0  ;;  %1190 = vmatpush3.bf16.msra.mxu0 %v1187_v25  ;;  %1215 = vmatpush3.bf16.msra.mxu1 %v1187_v25 }
  0xfc   :  { %v1191_v27 = vpack.c.bf16 %v478_v52, %v477_v54  ;;  %v409_v59 = vadd.f32 %v408_v58, %v1567_v28  ;;  %v819_v11 = vpop.permute.xlu1 %818 }
  0xfd   :  { %v480_v61 = vmax.f32 %v414_v56, 0.0 }
  0xfe   :  { %v479_v62 = vmax.f32 %v409_v59, 0.0  ;;  %v1090_v26 = vpop.f32.mrb[14].mxu0  ;;  %1192 = vmatprep.subr.bf16.mxu0 %v1191_v27  ;;  %1208 = vmatprep.subr.bf16.mxu1 %v1191_v27 }
  0xff   :  { %v424_v63 = vadd.f32 %v1090_v26, %v1573_v31  ;;  %v418_v0 = vpop.f32.mrb[15].mxu0  ;;  %1194 = vmatpush3.bf16.msra.mxu0 %v1191_v27  ;;  %1216 = vmatpush3.bf16.msra.mxu1 %v1191_v27  ;;  %v497_v27 = vld [vmem:[%s1774_s4 + $0x50] sm:$0xff] }
 0x100   :  { %v1195_v2 = vpack.c.bf16 %v480_v61, %v479_v62  ;;  %v419_v29 = vadd.f32 %v418_v0, %v1571_v30  ;;  %v1663_v50 = vpop.permute.xlu1 %624 }
 0x101   :  { %v482_v4 = vmax.f32 %v424_v63, 0.0  ;;  %v829_v63 = vpop.permute.xlu0 %828 }
 0x102   :  { %v481_v6 = vmax.f32 %v419_v29, 0.0  ;;  %v1631_v7 = vpop.f32.mrb[16].mxu0  ;;  %1196 = vmatprep.subr.bf16.mxu0 %v1195_v2  ;;  %1209 = vmatprep.subr.bf16.mxu1 %v1195_v2  ;;  %v498_v29 = vld [vmem:[%s1774_s4 + $0x58] sm:$0xff] }
 0x103   :  { %v1633_v28 = vpop.f32.mrb[17].mxu0  ;;  %1198 = vmatpush3.bf16.msra.mxu0 %v1195_v2  ;;  %1217 = vmatpush3.bf16.msra.mxu1 %v1195_v2 }
 0x104   :  { %v1199_v31 = vpack.c.bf16 %v482_v4, %v481_v6  ;;  %v834_v0 = vpop.permute.xlu1 %833  ;;  %v499_v4 = vld [vmem:[%s1774_s4 + $0x60] sm:$0xff] }
 0x106   :  { %v1637_v10 = vpop.f32.mrb[18].mxu0  ;;  %1200 = vmatprep.subr.bf16.mxu0 %v1199_v31  ;;  %1210 = vmatprep.subr.bf16.mxu1 %v1199_v31 }
 0x107   :  { %v1639_v30 = vpop.f32.mrb[19].mxu0  ;;  %1202 = vmatpush3.bf16.msra.mxu0 %v1199_v31  ;;  %1218 = vmatpush3.bf16.msra.mxu1 %v1199_v31 }
 0x10a   :  { %v1099_v16 = vpop.f32.mrb[20].mxu0  ;;  %1136 = vmatmul.mubr.f32.vlgmr.msra.gmra.mrb[24].mxu0 %v488_v12  ;;  %1142 = vmatmul.mubr.f32.vlgmr.msra.gmra.mrb[0].mxu1 %v492_v13  ;;  %v501_v13 = vld [vmem:[%s1774_s4 + $0x70] sm:$0xff] }
 0x10b   :  { %v454_v17 = vadd.f32 %v1099_v16, %v191_v21  ;;  %v448_v19 = vpop.f32.mrb[21].mxu0  ;;  %1138 = vmatprep.mubr.f32.mxu0 %v489_v14  ;;  %1144 = vmatprep.mubr.f32.mxu1 %v493_v15  ;;  %v502_v15 = vld [vmem:[%s1774_s4 + $0x78] sm:$0xff]  ;;  %v503_v16 = vld [vmem:[%s1774_s4 + $0x80] sm:$0xff] }
 0x10c   :  { %v449_v47 = vadd.f32 %v448_v19, %v1616_v18  ;;  %v496_v18 = vld [vmem:[%s1774_s4 + $0x48] sm:$0xff]  ;;  %v505_v19 = vld [vmem:[%s1774_s4 + $0x90] sm:$0xff] }
 0x10d   :  { %v484_v21 = vmax.f32 %v454_v17, 0.0  ;;  %v504_v17 = vld [vmem:[%s1774_s4 + $0x88] sm:$0xff] }
 0x10e   :  { %v483_v25 = vmax.f32 %v449_v47, 0.0  ;;  %v1102_v51 = vpop.f32.mrb[22].mxu0  ;;  %1139 = vmatmul.mubr.f32.gmra.mrb[26].mxu0 %v490_v20  ;;  %1145 = vmatmul.mubr.f32.gmra.mrb[2].mxu1 %v494_v23  ;;  %v506_v20 = vld [vmem:[%s1774_s4 + $0x98] sm:$0xff]  ;;  %v860_v23 = vlaneseq }
 0x10f   :  { %v837_v52 = vmul.f32 %v824_v22, %v484_v21  ;;  %v464_v54 = vadd.f32 %v1102_v51, %v201_v3  ;;  %v458_v55 = vpop.f32.mrb[23].mxu0  ;;  %1147 = vmatprep.mubr.f32.mxu1 %v495_v49  ;;  %v1710_v49 = vld [vmem:[%s1770_s0] sm:$0xf]  ;;  %s1256_s0 = smov [#allocation3]  }
 0x110   :  { %v836_v56 = vmul.f32 %v819_v11, %v483_v25  ;;  %v459_v58 = vadd.f32 %v458_v55, %v1621_v53  ;;  %v500_v11 = vld [vmem:[%s1774_s4 + $0x68] sm:$0xff]  ;;  %v1705_v47 = vshrl.u32 %v860_v23, 7  ;;  %s963_s4 = sshll.u32 %s1256_s0, 4  ;;  %s964_s4 = int_to_ptr.vmem [resolvable:$true] %s963_s4 }
 0x111   :  { %v842_v59 = vsel %vm840_vm2, %v837_v52, 0.0  ;;  %v486_v61 = vmax.f32 %v464_v54, 0.0  ;;  %s1231_s18 = scalar_lea.vmem %s964_s4, 16  ;;  %s1235_s19 = scalar_lea.vmem %s964_s4, 32 }
 0x112   :  { %v841_v62 = vsel %vm840_vm2, %v836_v56, 0.0  ;;  %v485_v26 = vmax.f32 %v459_v58, 0.0  ;;  %1148 = vmatmul.mubr.f32.gmra.mrb[4].mxu1 %v496_v18  ;;  %v862_v22 = vsub.s32 0, %v1705_v47  ;;  %v879_v21 = vsub.s32 1, %v1705_v47  ;;  %p1232_p0 = scmp.ne.s32.totalorder %s964_s4, %s1231_s18  ;;  %p1236_p1 = scmp.lt.s32.totalorder %s964_s4, %s964_s4 }
 0x113   :  { %v843_v2 = vadd.f32 %v842_v59, %v841_v62  ;;  %1150 = vmatprep.mubr.f32.mxu1 %v497_v27  ;;  %v839_v53 = vmul.f32 %v834_v0, %v486_v61  ;;  %p1237_p2 = scmp.lt.s32.totalorder %s1235_s19, %s1231_s18 }
 0x114   :  { %v838_v3 = vmul.f32 %v829_v63, %v485_v26  ;;  %v868_v52 = vrot.slane %v1710_v49, %v862_v22  ;;  %v880_v62 = vrot.slane %v1710_v49, %v879_v21  ;;  %v434_v26 = vadd.f32 %v1631_v7, %v1577_v33 }
 0x115   :  { %v846_v12 = vsel %vm840_vm2, %v839_v53, 0.0  ;;  %v429_v63 = vadd.f32 %v1633_v28, %v1575_v32  ;;  %p1238_p3 = por %p1237_p2, %p1236_p1 }
 0x116   :  { %v844_v6 = vsel %vm840_vm2, %v838_v3, 0.0  ;;  %1151 = vmatmul.mubr.f32.gmra.mrb[6].mxu1 %v498_v29 }
 0x117   :  { %v845_v31 = vadd.f32 %v844_v6, %v843_v2  ;;  %1153 = vmatprep.mubr.f32.mxu1 %v499_v4  ;;  %v891_v4 = vsub.s32 2, %v1705_v47  ;;  %v444_v6 = vadd.f32 %v1637_v10, %v1607_v57  ;;  %p1239_p4 = pnand %p1238_p3, %p1232_p0 }
 0x119   :  { %v1688_v14 = vadd.f32 %v846_v12, %v845_v31  ;;  %v892_v57 = vrot.slane %v1710_v49, %v891_v4 }
 0x11a   :  { %1154 = vmatmul.mubr.f32.gmra.mrb[8].mxu1 %v500_v11 }
 0x11b   :  { %1156 = vmatprep.mubr.f32.mxu1 %v501_v13 }
 0x11e   :  { %1157 = vmatmul.mubr.f32.gmra.mrb[10].mxu1 %v502_v15 }
 0x11f   :  { %1159 = vmatprep.mubr.f32.mxu1 %v503_v16 }
 0x122   :  { %1160 = vmatmul.mubr.f32.gmra.mrb[12].mxu1 %v504_v17 }
 0x123   :  { %1162 = vmatprep.mubr.f32.mxu1 %v505_v19 }
 0x126   :  { %1163 = vmatmul.mubr.f32.gmra.mrb[14].mxu1 %v506_v20 }
 0x1dd   :  { %v1137_v25 = vpop.f32.mrb[24].mxu0  ;;  %v1143_v51 = vpop.f32.mrb[0].mxu1 }
 0x1de   :  { %v699_v54 = vadd.f32 %v1137_v25, %v1583_v36  ;;  %v719_v55 = vadd.f32 %v1143_v51, %v1589_v39  ;;  %v693_v18 = vpop.f32.mrb[25].mxu0  ;;  %v713_v56 = vpop.f32.mrb[1].mxu1 }
 0x1df   :  { %v694_v58 = vadd.f32 %v693_v18, %v1581_v35  ;;  %v714_v27 = vadd.f32 %v713_v56, %v1587_v38 }
 0x1e0   :  { %v793_v59 = vand.u32 2147483647, %v699_v54  ;;  %v797_v61 = vand.u32 2147483647, %v719_v55 }
 0x1e1   :  { %v792_v0 = vand.u32 2147483647, %v694_v58  ;;  %v796_v36 = vand.u32 2147483647, %v714_v27  ;;  %v1140_v2 = vpop.f32.mrb[26].mxu0  ;;  %v1146_v39 = vpop.f32.mrb[2].mxu1 }
 0x1e2   :  { %v870_v29 = vmul.f32 %v868_v52, %v793_v59  ;;  %v709_v53 = vadd.f32 %v1140_v2, %v1591_v40  ;;  %v729_v35 = vadd.f32 %v1146_v39, %v1599_v44  ;;  %v703_v38 = vpop.f32.mrb[27].mxu0  ;;  %v723_v3 = vpop.f32.mrb[3].mxu1  ;;  %v882_v31 = vmul.f32 %v880_v62, %v797_v61 }
 0x1e3   :  { %v869_v33 = vmul.f32 %v868_v52, %v792_v0  ;;  %v704_v7 = vadd.f32 %v703_v38, %v1585_v37  ;;  %v724_v32 = vadd.f32 %v723_v3, %v1593_v41  ;;  %v881_v40 = vmul.f32 %v880_v62, %v796_v36 }
 0x1e4   :  { %v874_v28 = vadd.f32 %v870_v29, %v434_v26  ;;  %v795_v11 = vand.u32 2147483647, %v709_v53  ;;  %v799_v12 = vand.u32 2147483647, %v729_v35  ;;  %v439_v37 = vadd.f32 %v1639_v30, %v1579_v34 }
 0x1e5   :  { %v873_v13 = vadd.f32 %v869_v33, %v429_v63  ;;  %v794_v15 = vand.u32 2147483647, %v704_v7  ;;  %v798_v44 = vand.u32 2147483647, %v724_v32  ;;  %v1149_v16 = vpop.f32.mrb[4].mxu1  ;;  %v903_v26 = vsub.s32 3, %v1705_v47 }
 0x1e6   :  { %v886_v17 = vadd.f32 %v882_v31, %v874_v28  ;;  %v872_v19 = vmul.f32 %v868_v52, %v795_v11  ;;  %v739_v20 = vadd.f32 %v1149_v16, %v1597_v43  ;;  %v733_v10 = vpop.f32.mrb[5].mxu1  ;;  %v884_v51 = vmul.f32 %v880_v62, %v799_v12 }
 0x1e7   :  { %v885_v41 = vadd.f32 %v881_v40, %v873_v13  ;;  %v871_v23 = vmul.f32 %v868_v52, %v794_v15  ;;  %v734_v21 = vadd.f32 %v733_v10, %v1595_v42  ;;  %v883_v18 = vmul.f32 %v880_v62, %v798_v44 }
 0x1e8   :  { %v876_v25 = vadd.f32 %v872_v19, %v444_v6  ;;  %v801_v54 = vand.u32 2147483647, %v739_v20  ;;  %v904_v29 = vrot.slane %v1710_v49, %v903_v26 }
 0x1e9   :  { %v875_v55 = vadd.f32 %v871_v23, %v439_v37  ;;  %v800_v56 = vand.u32 2147483647, %v734_v21  ;;  %v1152_v58 = vpop.f32.mrb[6].mxu1 }
 0x1ea   :  { %v888_v27 = vadd.f32 %v884_v51, %v876_v25  ;;  %v894_v59 = vmul.f32 %v892_v57, %v801_v54  ;;  %v749_v43 = vadd.f32 %v1152_v58, %v1609_v60  ;;  %v743_v61 = vpop.f32.mrb[7].mxu1 }
 0x1eb   :  { %v887_v63 = vadd.f32 %v883_v18, %v875_v55  ;;  %v893_v34 = vmul.f32 %v892_v57, %v800_v56  ;;  %v744_v30 = vadd.f32 %v743_v61, %v1601_v45  ;;  %v848_v55 = vrot.slane %v1688_v14, 4 }
 0x1ec   :  { %v898_v52 = vadd.f32 %v894_v59, %v886_v17  ;;  %v803_v42 = vand.u32 2147483647, %v749_v43 }
 0x1ed   :  { %v897_v0 = vadd.f32 %v893_v34, %v885_v41  ;;  %v802_v36 = vand.u32 2147483647, %v744_v30  ;;  %v1155_v2 = vpop.f32.mrb[8].mxu1 }
 0x1ee   :  { %v896_v39 = vmul.f32 %v892_v57, %v803_v42  ;;  %v759_v62 = vadd.f32 %v1155_v2, %v1605_v48  ;;  %v753_v53 = vpop.f32.mrb[9].mxu1 }
 0x1ef   :  { %v895_v35 = vmul.f32 %v892_v57, %v802_v36  ;;  %v754_v60 = vadd.f32 %v753_v53, %v1603_v46 }
 0x1f0   :  { %v900_v38 = vadd.f32 %v896_v39, %v888_v27  ;;  %v805_v3 = vand.u32 2147483647, %v759_v62 }
 0x1f1   :  { %v899_v4 = vadd.f32 %v895_v35, %v887_v63  ;;  %v804_v6 = vand.u32 2147483647, %v754_v60  ;;  %v1158_v33 = vpop.f32.mrb[10].mxu1 }
 0x1f2   :  { %v906_v45 = vmul.f32 %v904_v29, %v805_v3  ;;  %v769_v7 = vadd.f32 %v1158_v33, %v1613_v8  ;;  %v763_v32 = vpop.f32.mrb[11].mxu1 }
 0x1f3   :  { %v905_v28 = vmul.f32 %v904_v29, %v804_v6  ;;  %v764_v31 = vadd.f32 %v763_v32, %v1611_v5  ;;  %v858_v32 = vpop.permute.xlu0 %857 }
 0x1f4   :  { %v910_v11 = vadd.f32 %v906_v45, %v898_v52  ;;  %v807_v48 = vand.u32 2147483647, %v769_v7 }
 0x1f5   :  { %v909_v12 = vadd.f32 %v905_v28, %v897_v0  ;;  %v806_v49 = vand.u32 2147483647, %v764_v31  ;;  %v1161_v13 = vpop.f32.mrb[12].mxu1 }
 0x1f6   :  { %v918_v40 = vmin.f32 %v910_v11, 0.0  ;;  %v908_v15 = vmul.f32 %v904_v29, %v807_v48  ;;  %v773_v46 = vpop.f32.mrb[13].mxu1  ;;  %v779_v21 = vadd.f32 %v1161_v13, %v1628_v1  ;;  %vm914_vm3 = vcmp.gt.f32.partialorder %v910_v11, 0.0 }
 0x1f7   :  { %v917_v44 = vmin.f32 %v909_v12, 0.0  ;;  %v907_v16 = vmul.f32 %v904_v29, %v806_v49  ;;  %v774_v25 = vadd.f32 %v773_v46, %v1623_v24  ;;  %vm913_vm4 = vcmp.gt.f32.partialorder %v909_v12, 0.0 }
 0x1f8   :  { %v923_v17 = vmul.f32 1.442695, %v918_v40  ;;  %v912_v19 = vadd.f32 %v908_v15, %v900_v38  ;;  %v809_v56 = vand.u32 2147483647, %v779_v21  ;;  %v849_v24 = vadd.f32 %v848_v55, %v1688_v14 }
 0x1f9   :  { %v921_v20 = vmul.f32 1.442695, %v917_v44  ;;  %v911_v57 = vadd.f32 %v907_v16, %v899_v4  ;;  %v1164_v10 = vpop.f32.mrb[14].mxu1  ;;  %v808_v43 = vand.u32 2147483647, %v774_v25 }
 0x1fa   :  { %1223 = vpow2.f32 %v923_v17  ;;  %v920_v8 = vmin.f32 %v912_v19, 0.0  ;;  %v783_v37 = vpop.f32.mrb[15].mxu1  ;;  %v789_v27 = vadd.f32 %v1164_v10, %v1663_v50  ;;  %vm916_vm5 = vcmp.gt.f32.partialorder %v912_v19, 0.0 }
 0x1fb   :  { %1225 = vpow2.f32 %v921_v20  ;;  %v919_v5 = vmin.f32 %v911_v57, 0.0  ;;  %v784_v61 = vadd.f32 %v783_v37, %v1635_v9  ;;  %vm915_vm6 = vcmp.gt.f32.partialorder %v911_v57, 0.0 }
 0x1fc   :  { %v927_v41 = vmul.f32 1.442695, %v920_v8  ;;  %v811_v0 = vand.u32 2147483647, %v789_v27  ;;  %v850_v35 = vrot.slane %v849_v24, 2 }
 0x1fd   :  { %v925_v23 = vmul.f32 1.442695, %v919_v5  ;;  %v810_v39 = vand.u32 2147483647, %v784_v61 }
 0x1fe   :  { %1227 = vpow2.f32 %v927_v41  ;;  %v851_v4 = vadd.f32 %v850_v35, %v849_v24 }
 0x1ff   :  { %1229 = vpow2.f32 %v925_v23 }
 0x200   :  { %v852_v33 = vrot.slane %v851_v4, 1 }
 0x202   :  { %v853_v28 = vadd.f32 %v852_v33, %v851_v4 }
 0x204   :  { %v1224_v51 = vpop.eup %1223 }
 0x205   :  { %v1226_v54 = vpop.eup %1225  ;;  %v998_v18 = vadd.f32 -1.0, %v1224_v51 }
 0x206   :  { %v997_v58 = vadd.f32 -1.0, %v1226_v54 }
 0x207   :  { %v934_v59 = vsel %vm914_vm3, %v910_v11, %v998_v18  ;;  %v863_v11 = vrot.slane %v858_v32, %v862_v22 }
 0x208   :  { %v1228_v26 = vpop.eup %1227  ;;  %v938_v63 = vmul.f32 %v934_v59, %v809_v56  ;;  %v933_v1 = vsel %vm913_vm4, %v909_v12, %v997_v58 }
 0x209   :  { %v1230_v34 = vpop.eup %1229  ;;  %v937_v30 = vmul.f32 %v933_v1, %v808_v43  ;;  %v1000_v52 = vadd.f32 -1.0, %v1228_v26  ;;  %v864_v12 = vadd.f32 %v863_v11, %v853_v28 }
 0x20a   :  { %v942_v42 = vsel %vm840_vm2, %v938_v63, 0.0  ;;  %v999_v36 = vadd.f32 -1.0, %v1230_v34 }
 0x20b   :  { %v941_v50 = vsel %vm840_vm2, %v937_v30, 0.0  ;;  %v936_v2 = vsel %vm916_vm5, %v912_v19, %v1000_v52 }
 0x20c   :  { %v943_v62 = vadd.f32 %v942_v42, %v941_v50  ;;  %v940_v9 = vmul.f32 %v936_v2, %v811_v0  ;;  %v935_v29 = vsel %vm915_vm6, %v911_v57, %v999_v36 }
 0x20d   :  { %v939_v53 = vmul.f32 %v935_v29, %v810_v39 }
 0x20e   :  { %v946_v38 = vsel %vm840_vm2, %v940_v9, 0.0 }
 0x20f   :  { %v944_v60 = vsel %vm840_vm2, %v939_v53, 0.0 }
 0x210   :  { %v945_v14 = vadd.f32 %v944_v60, %v943_v62 }
 0x212   :  { %v947_v3 = vadd.f32 %v946_v38, %v945_v14 }
 0x214   :  { %v948_v6 = vrot.slane %v947_v3, 4 }
 0x216   :  { %v949_v45 = vadd.f32 %v948_v6, %v947_v3 }
 0x218   :  { %v950_v7 = vrot.slane %v949_v45, 2 }
 0x21a   :  { %v951_v31 = vadd.f32 %v950_v7, %v949_v45 }
 0x21c   :  { %v952_v48 = vrot.slane %v951_v31, 1 }
 0x21e   :  { %v953_v49 = vadd.f32 %v952_v48, %v951_v31 }
 0x220   :  { %v954_v13 = vadd.f32 %v953_v49, %v864_v12 }
 0x222   :  { %956 = vst.msk [vmem:[#allocation3] sm:$0x1] %vm955_vm7, %v954_v13 }
 0x223   :  { %1242 = shalt.err (!%p1239_p4)
}
 0x224   :  { %s1243_s22 = scalar_lea.hbm %s1778_s8, 16 }
 0x225   :  { %p1244_p5 = scmp.ne.s32.totalorder %s1778_s8, %s1243_s22  ;;  %p1247_p6 = scmp.lt.u32.totalorder %s1243_s22, %s1778_s8 }
 0x227   :  { %p1249_p7 = pnand %p1247_p6, %p1244_p5 }
 0x229   :  { %1252 = shalt.err (!%p1249_p7)
}
 0x22a   :  { %966 = dma.vmem_to_hbm [thread:$0]  %s964_s4, 16, %s1778_s8, [#allocation4]  }
 0x22b   :  { %1253 = dma.done.wait [#allocation4], 16  }
 0x22c   :  { %1254 = vsyncadd [#allocation4], 4294967280 }
 0x22d   :  { %970 = vsyncpa [#allocation4], 1 }

</bundles_post_ra>
